<compile_context>
chip_gen: v6e
topology: v6e:2x2x1
jax: 0.10.0
libtpu: 0.0.40
codegen_flags: <defaults>
</compile_context>

<pallas_src>
import jax
import jax.numpy as jnp
from jax.experimental import pallas as pl
from jax.experimental.pallas import tpu as pltpu

LANES = 128
SUBLANES = 8
_CHUNK_ROWS = 512                      # in-kernel compute chunk (bounds scratch)
_TILE_BYTES_PER_INPUT = 4 * 1024 * 1024  # per-input per-buffer DMA tile budget
_VMEM_LIMIT_BYTES = 32 * 1024 * 1024


def _num_tensorcores():
    """TensorCores sharing one JAX device (megacore grid-parallel sharding)."""
    try:
        kind = jax.devices()[0].device_kind.lower()
    except Exception:
        return 1
    # v7x (and v4 megacore) expose 2 TensorCores behind one device; v5e / v6e
    # are single-TC, where a 2-long "parallel" axis would just be a serial
    # loop with extra writeback + duplicated clamped blocks.
    if "v7" in kind or "7x" in kind or "v4" in kind:
        return 2
    return 1


def _make_mse_kernel(tr, chunk, steps, n_rows, acc_rows, needs_mask):
    n_full_blocks = n_rows // tr  # grid blocks whose every row is valid

    def accumulate(p_ref, l_ref, out_ref, masked, blk):
        # Static Python loop over sub-chunks of the big DMA tile: keeps f32
        # intermediates (casts, d, d*d, mask) bounded to ~chunk*128*4 bytes.
        for start in range(0, tr, chunk):
            rows = min(chunk, tr - start)
            p = p_ref[pl.ds(start, rows), :].astype(jnp.float32)
            l = l_ref[pl.ds(start, rows), :].astype(jnp.float32)
            d = p - l
            d2 = d * d
            if masked:  # only traced into the pl.when-gated boundary path
                row = (blk * tr + start
                       + jax.lax.broadcasted_iota(jnp.int32, (rows, LANES), 0))
                d2 = jnp.where(row < n_rows, d2, 0.0)
            # Pure-VPU fold into the resident accumulator; acc_rows/8 vregs
            # give independent add chains that fill the VALU slots.
            out_ref[...] += d2.reshape(rows // acc_rows, acc_rows, LANES).sum(axis=0)

    def kernel(p_ref, l_ref, out_ref):
        c = pl.program_id(0)
        i = pl.program_id(1)

        @pl.when(i == 0)
        def _():
            out_ref[...] = jnp.zeros_like(out_ref)

        if not needs_mask:  # trace-time: grid covers exactly n_rows
            accumulate(p_ref, l_ref, out_ref, False, None)
        else:
            blk = c * steps + i

            @pl.when(blk < n_full_blocks)      # fast path: fully valid block
            def _():
                accumulate(p_ref, l_ref, out_ref, False, None)

            @pl.when(blk >= n_full_blocks)     # ragged last / duplicated block
            def _():
                accumulate(p_ref, l_ref, out_ref, True, blk)

    return kernel


def mse_loss(prediction, label, *, tile_rows=None):
    """Equivalent to torch.nn.MSELoss()(prediction, label): mean((p - l)^2)."""
    assert prediction.shape == label.shape, "MSELoss requires matching shapes"
    n_elem = prediction.size

    p_flat = prediction.reshape(-1)  # row-major flatten: free bitcast
    l_flat = label.reshape(-1)

    n_rows = pl.cdiv(n_elem, LANES)

    # Tiny inputs: not worth a kernel launch.
    if n_rows < SUBLANES:
        d = p_flat.astype(jnp.float32) - l_flat.astype(jnp.float32)
        return (jnp.sum(d * d) / jnp.float32(n_elem)).astype(jnp.float32)

    tail = n_elem % LANES
    if tail:
        # TODO(synk): lane-misaligned inputs pay one materialized zero-padded
        # copy per input (~N elements).  Both pads are zero, so the padded
        # elements contribute exactly 0 to the sum (no element mask needed).
        pad = LANES - tail
        p_flat = jnp.pad(p_flat, (0, pad))
        l_flat = jnp.pad(l_flat, (0, pad))

    p2 = p_flat.reshape(n_rows, LANES)  # free bitcast
    l2 = l_flat.reshape(n_rows, LANES)

    # Byte-budgeted tile rows: biggest multiple of 8 whose per-input buffer is
    # <= _TILE_BYTES_PER_INPUT, so bf16 automatically gets 2x the rows of f32.
    itemsize = max(jnp.dtype(prediction.dtype).itemsize,
                   jnp.dtype(label.dtype).itemsize)
    tr = _TILE_BYTES_PER_INPUT // (LANES * itemsize)
    if tile_rows is not None:
        tr = min(tr, tile_rows)
    tr = min(tr, (n_rows // SUBLANES) * SUBLANES)
    tr = max(SUBLANES, (tr // SUBLANES) * SUBLANES)

    # Widened accumulator: 32 rows (4 vregs) when divisible, else 16 / 8.
    acc_rows = 32 if tr % 32 == 0 else (16 if tr % 16 == 0 else SUBLANES)

    n_blocks = pl.cdiv(n_rows, tr)
    num_cores = max(1, min(_num_tensorcores(), n_blocks))
    steps = pl.cdiv(n_blocks, num_cores)
    # Mask only if the (num_cores, steps) grid covers rows beyond n_rows
    # (ragged last block and/or duplicated clamped blocks).
    needs_mask = (num_cores * steps * tr) != n_rows

    def row_block(c, i):
        # Clamp so a fully-out-of-range block (odd n_blocks with 2 cores)
        # re-reads the last valid block; the gated in-kernel mask zeroes it.
        return (jnp.minimum(c * steps + i, n_blocks - 1), 0)

    partials = pl.pallas_call(
        _make_mse_kernel(tr, _CHUNK_ROWS, steps, n_rows, acc_rows, needs_mask),
        out_shape=jax.ShapeDtypeStruct((num_cores, acc_rows, LANES), jnp.float32),
        grid_spec=pltpu.PrefetchScalarGridSpec(
            num_scalar_prefetch=0,
            grid=(num_cores, steps),
            in_specs=[
                pl.BlockSpec((tr, LANES), row_block),
                pl.BlockSpec((tr, LANES), row_block),
            ],
            # Squeezed leading dim: kernel writes an (acc_rows, 128) block
            # directly (no [None] broadcast on the accumulator path).
            out_specs=pl.BlockSpec((None, acc_rows, LANES), lambda c, i: (c, 0, 0)),
        ),
        compiler_params=pltpu.CompilerParams(
            dimension_semantics=("parallel", "arbitrary"),
            vmem_limit_bytes=_VMEM_LIMIT_BYTES,
        ),
    )(p2, l2)

    total = jnp.sum(partials)  # single small cross-lane reduce outside the kernel
    return (total / jnp.float32(n_elem)).astype(jnp.float32)


if __name__ == "__main__":
    key = jax.random.PRNGKey(0)
    k1, k2, k3, k4, k5, k6 = jax.random.split(key, 6)

    mse = jax.jit(mse_loss)

    # Primary check: NCHW f32, exactly lane-tileable.
    pred = jax.random.normal(k1, (2, 4, 16, 16), dtype=jnp.float32)
    lab = jax.random.normal(k2, (2, 4, 16, 16), dtype=jnp.float32)
    loss = mse(pred, lab)
    jax.block_until_ready(loss)
    ref = jnp.mean((pred - lab) ** 2)
    assert jnp.allclose(loss, ref, rtol=1e-5, atol=1e-6), (loss, ref)

    # Ragged check: rows not a multiple of the tile + a <128-element tail.
    pred2 = jax.random.normal(k3, (3, 5, 7, 11), dtype=jnp.float32)
    lab2 = jax.random.normal(k4, (3, 5, 7, 11), dtype=jnp.float32)
    loss2 = mse(pred2, lab2)
    jax.block_until_ready(loss2)
    ref2 = jnp.mean((pred2 - lab2) ** 2)
    assert jnp.allclose(loss2, ref2, rtol=1e-5, atol=1e-6), (loss2, ref2)

    # bf16 inputs stream in native dtype; accumulation is f32 in-kernel.
    pred3 = jax.random.normal(k5, (4, 8, 32, 32), dtype=jnp.bfloat16)
    lab3 = jax.random.normal(k6, (4, 8, 32, 32), dtype=jnp.bfloat16)
    loss3 = mse(pred3, lab3)
    jax.block_until_ready(loss3)
    ref3 = jnp.mean((pred3.astype(jnp.float32) - lab3.astype(jnp.float32)) ** 2)
    assert jnp.allclose(loss3, ref3, rtol=1e-4, atol=1e-6), (loss3, ref3)

    print("KERNEL_OK")
</pallas_src>

<mosaic_0001>
module attributes {stable_mosaic.version = 11 : i64} {
  func.func @kernel(%arg0: i32, %arg1: i32, %arg2: memref<16x128xf32, #tpu.memory_space<vmem>>, %arg3: memref<16x128xf32, #tpu.memory_space<vmem>>, %arg4: memref<1x16x128xf32, #tpu.memory_space<vmem>>) attributes {dimension_semantics = [#tpu.dimension_semantics<parallel>, #tpu.dimension_semantics<arbitrary>], iteration_bounds = array<i64: 1, 1>, scalar_prefetch = 0 : i64, scratch_operands = 0 : i64, tpu.core_type = #tpu.core_type<tc>, window_params = [{transform_indices = @transform_0, window_bounds = array<i64: 16, 128>}, {transform_indices = @transform_1, window_bounds = array<i64: 16, 128>}, {transform_indices = @transform_2, window_bounds = array<i64: 1, 16, 128>}]} {
    %c0_i32 = arith.constant 0 : i32
    %0 = arith.cmpi eq, %arg1, %c0_i32 : i32
    %1 = arith.extui %0 : i1 to i32
    %c0_i32_0 = arith.constant 0 : i32
    %2 = arith.cmpi ne, %1, %c0_i32_0 : i32
    scf.if %2 {
      %cst_10 = arith.constant 0.000000e+00 : f32
      %15 = vector.broadcast %cst_10 : f32 to vector<16x128xf32>
      %c0_11 = arith.constant 0 : index
      %c0_12 = arith.constant 0 : index
      %c0_13 = arith.constant 0 : index
      %16 = vector.load %arg4[%c0_11, %c0_12, %c0_13] : memref<1x16x128xf32, #tpu.memory_space<vmem>>, vector<1x16x128xf32>
      %17 = vector.shape_cast %16 : vector<1x16x128xf32> to vector<16x128xf32>
      %18 = vector.shape_cast %15 : vector<16x128xf32> to vector<1x16x128xf32>
      tpu.vector_store %arg4[%c0_11, %c0_12, %c0_13], %18 {strides = array<i32>} : memref<1x16x128xf32, #tpu.memory_space<vmem>>, vector<1x16x128xf32>,
    } else {
    }
    %c0 = arith.constant 0 : index
    %c0_1 = arith.constant 0 : index
    %3 = vector.load %arg2[%c0, %c0_1] : memref<16x128xf32, #tpu.memory_space<vmem>>, vector<16x128xf32>
    %c0_2 = arith.constant 0 : index
    %c0_3 = arith.constant 0 : index
    %4 = vector.load %arg3[%c0_2, %c0_3] : memref<16x128xf32, #tpu.memory_space<vmem>>, vector<16x128xf32>
    %5 = arith.subf %3, %4 : vector<16x128xf32>
    %6 = arith.mulf %5, %5 : vector<16x128xf32>
    %c0_4 = arith.constant 0 : index
    %c0_5 = arith.constant 0 : index
    %c0_6 = arith.constant 0 : index
    %7 = vector.load %arg4[%c0_4, %c0_5, %c0_6] : memref<1x16x128xf32, #tpu.memory_space<vmem>>, vector<1x16x128xf32>
    %8 = vector.shape_cast %7 : vector<1x16x128xf32> to vector<16x128xf32>
    %9 = vector.shape_cast %6 : vector<16x128xf32> to vector<1x16x128xf32>
    %cst = arith.constant dense<0.000000e+00> : vector<16x128xf32>
    %10 = vector.multi_reduction <add>, %9, %cst [0] : vector<1x16x128xf32> to vector<16x128xf32>
    %11 = arith.addf %8, %10 : vector<16x128xf32>
    %c0_7 = arith.constant 0 : index
    %c0_8 = arith.constant 0 : index
    %c0_9 = arith.constant 0 : index
    %12 = vector.load %arg4[%c0_7, %c0_8, %c0_9] : memref<1x16x128xf32, #tpu.memory_space<vmem>>, vector<1x16x128xf32>
    %13 = vector.shape_cast %12 : vector<1x16x128xf32> to vector<16x128xf32>
    %14 = vector.shape_cast %11 : vector<16x128xf32> to vector<1x16x128xf32>
    tpu.vector_store %arg4[%c0_7, %c0_8, %c0_9], %14 {strides = array<i32>} : memref<1x16x128xf32, #tpu.memory_space<vmem>>, vector<1x16x128xf32>,
    return
  }
  func.func @transform_0(%arg0: i32, %arg1: i32) -> (i32, i32) {
    %c1_i32 = arith.constant 1 : i32
    %0 = arith.muli %arg0, %c1_i32 : i32
    %1 = arith.addi %0, %arg1 : i32
    %c0_i32 = arith.constant 0 : i32
    %2 = arith.minsi %1, %c0_i32 : i32
    %c0_i32_0 = arith.constant 0 : i32
    %c0_i32_1 = arith.constant 0 : i32
    return %2, %c0_i32_0 : i32, i32
  }
  func.func @transform_1(%arg0: i32, %arg1: i32) -> (i32, i32) {
    %c1_i32 = arith.constant 1 : i32
    %0 = arith.muli %arg0, %c1_i32 : i32
    %1 = arith.addi %0, %arg1 : i32
    %c0_i32 = arith.constant 0 : i32
    %2 = arith.minsi %1, %c0_i32 : i32
    %c0_i32_0 = arith.constant 0 : i32
    %c0_i32_1 = arith.constant 0 : i32
    return %2, %c0_i32_0 : i32, i32
  }
  func.func @transform_2(%arg0: i32, %arg1: i32) -> (i32, i32, i32) {
    %c0_i32 = arith.constant 0 : i32
    %c0_i32_0 = arith.constant 0 : i32
    %c0_i32_1 = arith.constant 0 : i32
    return %arg0, %c0_i32, %c0_i32_0 : i32, i32, i32
  }
}

</mosaic_0001>

<bundles_post_ra>
// kernel: mse_loss.1
= control target key start
LH: loop header
LB: loop body
LE: loop exit
PB: predicated region body
PF: predicated region fallthrough
CT: control target
= control target key end

     0   :  { %s147_s0 = inlined_call_operand.vmem [shape: f32[16,128], index: 0, kind: input, shape index: {}]   ;;  %s148_s1 = inlined_call_operand.vmem [shape: f32[16,128], index: 1, kind: input, shape index: {}]   ;;  %s149_s2 = inlined_call_operand.vmem [shape: f32[1,16,128], index: 2, kind: output, shape index: {}]  }
   0x1   :  { %v81_v0 = vld [vmem:[%s147_s0] sm:$0xff]  ;;  %v82_v2 = vld [vmem:[%s147_s0 + $0x8] sm:$0xff] }
   0x2   :  { %v83_v1 = vld [vmem:[%s148_s1] sm:$0xff]  ;;  %v84_v4 = vld [vmem:[%s148_s1 + $0x8] sm:$0xff] }
   0x3   :  { %v85_v3 = vsub.f32 %v81_v0, %v83_v1  ;;  %v86_v5 = vsub.f32 %v82_v2, %v84_v4 }
   0x5   :  { %v87_v6 = vmul.f32 %v85_v3, %v85_v3  ;;  %v88_v7 = vmul.f32 %v86_v5, %v86_v5 }
   0x7   :  { %95 = vst [vmem:[%s149_s2] sm:$0xff] %v87_v6  ;;  %96 = vst [vmem:[%s149_s2 + $0x8] sm:$0xff] %v88_v7 }

</bundles_post_ra>
